<compile_context>
chip_gen: v7x
topology: tpu7x:2x2x1
jax: 0.10.0
libtpu: 0.0.40
codegen_flags: <defaults>
</compile_context>

<pallas_src>
import functools

import jax
import jax.numpy as jnp
from jax.experimental import pallas as pl
from jax.experimental.pallas import tpu as pltpu


def _round_up(x, m):
    return ((x + m - 1) // m) * m


# ------------------------------ Pallas kernel -------------------------------

def _streaming_conv1d_kernel(cache_ref, x_ref, w_ref, b_ref, out_ref, xcf_ref,
                             *, K, T, B_blk, cpad, w_pad):
    """One block of B_blk batch elements per grid step (time-major compute).

    cache_ref : (B_blk, K-1, Cin)         bf16  previous frames (time-major)
    x_ref     : (B_blk, T,   Cin)         bf16  new frames      (time-major)
    w_ref     : (K, Cin, Cout_pad)        bf16  per-tap weights (whole array)
    b_ref     : (1, Cout_pad)             f32   bias            (whole array)
    out_ref   : (B_blk, T, Cout_pad)            output (time-major, lane-dense)
    xcf_ref   : (B_blk*w_pad + cpad, Cin) bf16  scratch: flat per-batch windows
    """
    M = B_blk * w_pad
    o0 = cpad - (K - 1)        # first valid window row inside each batch slot

    # Fuse the [cache; x] time-concat into VMEM (no HBM concat op).  Each batch
    # slot spans w_pad rows (multiple of 16 = bf16 sublane packing); the cache
    # region is padded to cpad rows so the large x copy starts sublane-aligned.
    for b in range(B_blk):
        base = b * w_pad
        xcf_ref[base + o0:base + cpad, :] = cache_ref[b]
        xcf_ref[base + cpad:base + cpad + T, :] = x_ref[b]

    # K shifted matmuls (no im2col scratch).  Batch is folded into the MXU M
    # dimension; accumulation stays in f32.  Rows falling into slot padding are
    # garbage and are never read back.
    acc = jnp.dot(xcf_ref[0:M, :], w_ref[0], preferred_element_type=jnp.float32)
    for k in range(1, K):
        acc = acc + jnp.dot(xcf_ref[k:k + M, :], w_ref[k],
                            preferred_element_type=jnp.float32)

    # f32 epilogue: bias add + lane-dense (Cout_pad multiple of 128) store.
    bias = b_ref[...]
    for b in range(B_blk):
        rows = acc[b * w_pad + o0:b * w_pad + o0 + T, :]
        out_ref[b] = (rows + bias).astype(out_ref.dtype)


def _streaming_conv1d(x, cache, w, b, *, max_batch_block=8):
    """x: (N, Cin, T), cache: (N, Cin, K-1), w: (Cout, Cin, K), b: (Cout,)
    -> out (N, Cout, T)."""
    N, Cin, T = x.shape
    Cout, _, K = w.shape
    out_dtype = x.dtype

    cout_pad = _round_up(Cout, 128)          # lane-dense output / MXU N dim
    cpad = _round_up(K - 1, 16)              # cache region, bf16-sublane aligned
    w_pad = _round_up(cpad + T, 16)          # per-batch window slot
    b_blk = next(d for d in range(min(N, max_batch_block), 0, -1) if N % d == 0)

    # Layout plumbing at the kernel boundary (NCW module interface -> the
    # time-major layout the kernel computes in).  Transpose + bf16 cast fuse
    # into a single XLA copy; a real time-major streaming stack would carry the
    # (N, T, C) layout across layers and drop these entirely.
    x_tm = jnp.transpose(x, (0, 2, 1)).astype(jnp.bfloat16)         # (N, T, Cin)
    c_tm = jnp.transpose(cache, (0, 2, 1)).astype(jnp.bfloat16)     # (N, K-1, Cin)
    w_taps = jnp.transpose(w, (2, 1, 0))                            # (K, Cin, Cout)
    w_taps = jnp.pad(w_taps, ((0, 0), (0, 0), (0, cout_pad - Cout))
                     ).astype(jnp.bfloat16)
    b_pad = jnp.pad(b.astype(jnp.float32), (0, cout_pad - Cout)).reshape(1, cout_pad)

    kernel = functools.partial(_streaming_conv1d_kernel, K=K, T=T, B_blk=b_blk,
                               cpad=cpad, w_pad=w_pad)

    out_tm = pl.pallas_call(
        kernel,
        out_shape=jax.ShapeDtypeStruct((N, T, cout_pad), out_dtype),
        grid_spec=pltpu.PrefetchScalarGridSpec(
            num_scalar_prefetch=0,
            grid=(N // b_blk,),
            in_specs=[
                pl.BlockSpec((b_blk, K - 1, Cin), lambda n: (n, 0, 0)),
                pl.BlockSpec((b_blk, T, Cin), lambda n: (n, 0, 0)),
                # Constant operands: whole array resident in VMEM for the call
                # (no per-grid-step double-buffering of the weights/bias).
                pl.BlockSpec(memory_space=pltpu.MemorySpace.VMEM),
                pl.BlockSpec(memory_space=pltpu.MemorySpace.VMEM),
            ],
            out_specs=pl.BlockSpec((b_blk, T, cout_pad), lambda n: (n, 0, 0)),
            scratch_shapes=[
                pltpu.VMEM((b_blk * w_pad + cpad, Cin), jnp.bfloat16),
            ],
        ),
        compiler_params=pltpu.CompilerParams(
            dimension_semantics=("parallel",)),   # batch blocks -> both TCs on v7x
    )(c_tm, x_tm, w_taps, b_pad)

    # TODO(synk): for real model sizes, re-derive b_blk / T tiling against the
    # per-generation VMEM budget (64 MiB v7x vs 128 MiB v5e/v6e; raise
    # vmem_limit_bytes) and pad Cin to an MXU multiple as well.
    out = jnp.transpose(out_tm[..., :Cout], (0, 2, 1))               # (N, Cout, T)
    return out


# ---------------------- ModelStreamingWrapper.forward -----------------------

def model_streaming_wrapper_forward(params, x, cache=None):
    """Mirrors ModelStreamingWrapper.forward:
       cache given   -> (output, new_cache)
       cache is None -> output
    """
    w, b = params["weight"], params["bias"]
    Cout, Cin, K = w.shape
    N, _, T = x.shape

    if K == 1:
        # Degenerate stateless 1x1 conv (empty cache); plain JAX, not the
        # Pallas hot path.
        y = jnp.einsum("nct,oc->not", x, w[:, :, 0]) + b.reshape(1, -1, 1)
        return y if cache is None else (y, jnp.zeros((N, Cin, 0), x.dtype))

    cache_in = jnp.zeros((N, Cin, K - 1), x.dtype) if cache is None else cache
    out = _streaming_conv1d(x, cache_in, w, b)
    if cache is None:
        return out
    # new_cache = last K-1 frames of [cache; x], kept at input precision.  A
    # free wrapper slice — no extra kernel output / DMA, no bf16 laundering.
    if T >= K - 1:
        new_cache = x[:, :, T - (K - 1):]
    else:
        new_cache = jnp.concatenate([cache_in, x], axis=2)[:, :, -(K - 1):]
    return out, new_cache


# -------------------------------- reference ---------------------------------

def _reference_out(w, b, x, cache):
    xc = jnp.concatenate([cache, x], axis=2)
    y = jax.lax.conv_general_dilated(
        xc, w, window_strides=(1,), padding="VALID",
        dimension_numbers=("NCW", "OIW", "NCW"),
        precision=jax.lax.Precision.HIGHEST)
    return y + b.reshape(1, -1, 1)


# ----------------------------------- main ------------------------------------

if __name__ == "__main__":
    N, Cin, Cout, T, K = 2, 4, 8, 16, 3

    key = jax.random.PRNGKey(0)
    k_w, k_b, k_x, k_c = jax.random.split(key, 4)
    params = {
        "weight": jax.random.normal(k_w, (Cout, Cin, K), jnp.float32) * 0.1,
        "bias": jax.random.normal(k_b, (Cout,), jnp.float32) * 0.1,
    }
    x = jax.random.normal(k_x, (N, Cin, T), jnp.float32)
    cache = jax.random.normal(k_c, (N, Cin, K - 1), jnp.float32)

    fwd = jax.jit(model_streaming_wrapper_forward)

    # With cache -> (output, new_cache)
    out, new_cache = fwd(params, x, cache)
    out = jax.block_until_ready(out)
    new_cache = jax.block_until_ready(new_cache)

    # Without cache -> output only
    out_nc = jax.block_until_ready(fwd(params, x))

    # Reference uses the same bf16-rounded activations/weights (the kernel runs
    # the bf16 MXU path with f32 accumulation); bias stays f32; cache semantics
    # (new_cache) stay exact f32.
    to_bf = lambda a: a.astype(jnp.bfloat16).astype(jnp.float32)
    ref_out = _reference_out(to_bf(params["weight"]), params["bias"],
                             to_bf(x), to_bf(cache))
    ref_out_nc = _reference_out(to_bf(params["weight"]), params["bias"],
                                to_bf(x), jnp.zeros((N, Cin, K - 1), jnp.float32))
    ref_cache = jnp.concatenate([cache, x], axis=2)[:, :, -(K - 1):]

    assert out.shape == (N, Cout, T)
    assert out_nc.shape == (N, Cout, T)
    assert new_cache.shape == (N, Cin, K - 1)
    assert jnp.allclose(out, ref_out, atol=1e-5, rtol=1e-5)
    assert jnp.allclose(out_nc, ref_out_nc, atol=1e-5, rtol=1e-5)
    assert jnp.array_equal(new_cache, ref_cache)

    print("KERNEL_OK")
</pallas_src>

<mosaic_0001>
module attributes {stable_mosaic.version = 11 : i64} {
  func.func @_streaming_conv1d_kernel(%arg0: i32, %arg1: memref<2x2x4xbf16, #tpu.memory_space<vmem>>, %arg2: memref<2x16x4xbf16, #tpu.memory_space<vmem>>, %arg3: memref<3x4x128xbf16, #tpu.memory_space<vmem>>, %arg4: memref<1x128xf32, #tpu.memory_space<vmem>>, %arg5: memref<2x16x128xf32, #tpu.memory_space<vmem>>, %arg6: memref<80x4xbf16, #tpu.memory_space<vmem>>) attributes {dimension_semantics = [#tpu.dimension_semantics<parallel>], iteration_bounds = array<i64: 1>, scalar_prefetch = 0 : i64, scratch_operands = 1 : i64, tpu.core_type = #tpu.core_type<tc>, window_params = [{transform_indices = @transform_0, window_bounds = array<i64: 2, 2, 4>}, {transform_indices = @transform_1, window_bounds = array<i64: 2, 16, 4>}, {pipeline_mode = #tpu.pipeline_mode<synchronous>, transform_indices = @transform_2, window_bounds = array<i64: 3, 4, 128>}, {pipeline_mode = #tpu.pipeline_mode<synchronous>, transform_indices = @transform_3, window_bounds = array<i64: 1, 128>}, {transform_indices = @transform_4, window_bounds = array<i64: 2, 16, 128>}]} {
    %c0 = arith.constant 0 : index
    %c0_0 = arith.constant 0 : index
    %c0_1 = arith.constant 0 : index
    %0 = vector.load %arg1[%c0, %c0_0, %c0_1] : memref<2x2x4xbf16, #tpu.memory_space<vmem>>, vector<1x2x4xbf16>
    %1 = vector.shape_cast %0 : vector<1x2x4xbf16> to vector<2x4xbf16>
    %c14 = arith.constant 14 : index
    %c0_2 = arith.constant 0 : index
    %2 = vector.load %arg6[%c14, %c0_2] : memref<80x4xbf16, #tpu.memory_space<vmem>>, vector<2x4xbf16>
    tpu.vector_store %arg6[%c14, %c0_2], %1 {strides = array<i32>} : memref<80x4xbf16, #tpu.memory_space<vmem>>, vector<2x4xbf16>,
    %c0_3 = arith.constant 0 : index
    %c0_4 = arith.constant 0 : index
    %c0_5 = arith.constant 0 : index
    %3 = vector.load %arg2[%c0_3, %c0_4, %c0_5] : memref<2x16x4xbf16, #tpu.memory_space<vmem>>, vector<1x16x4xbf16>
    %4 = vector.shape_cast %3 : vector<1x16x4xbf16> to vector<16x4xbf16>
    %c16 = arith.constant 16 : index
    %c0_6 = arith.constant 0 : index
    %5 = vector.load %arg6[%c16, %c0_6] : memref<80x4xbf16, #tpu.memory_space<vmem>>, vector<16x4xbf16>
    tpu.vector_store %arg6[%c16, %c0_6], %4 {strides = array<i32>} : memref<80x4xbf16, #tpu.memory_space<vmem>>, vector<16x4xbf16>,
    %c1 = arith.constant 1 : index
    %c0_7 = arith.constant 0 : index
    %c0_8 = arith.constant 0 : index
    %6 = vector.load %arg1[%c1, %c0_7, %c0_8] : memref<2x2x4xbf16, #tpu.memory_space<vmem>>, vector<1x2x4xbf16>
    %7 = vector.shape_cast %6 : vector<1x2x4xbf16> to vector<2x4xbf16>
    %c46 = arith.constant 46 : index
    %c0_9 = arith.constant 0 : index
    %8 = vector.load %arg6[%c46, %c0_9] : memref<80x4xbf16, #tpu.memory_space<vmem>>, vector<2x4xbf16>
    tpu.vector_store %arg6[%c46, %c0_9], %7 {strides = array<i32>} : memref<80x4xbf16, #tpu.memory_space<vmem>>, vector<2x4xbf16>,
    %c1_10 = arith.constant 1 : index
    %c0_11 = arith.constant 0 : index
    %c0_12 = arith.constant 0 : index
    %9 = vector.load %arg2[%c1_10, %c0_11, %c0_12] : memref<2x16x4xbf16, #tpu.memory_space<vmem>>, vector<1x16x4xbf16>
    %10 = vector.shape_cast %9 : vector<1x16x4xbf16> to vector<16x4xbf16>
    %c48 = arith.constant 48 : index
    %c0_13 = arith.constant 0 : index
    %11 = vector.load %arg6[%c48, %c0_13] : memref<80x4xbf16, #tpu.memory_space<vmem>>, vector<16x4xbf16>
    tpu.vector_store %arg6[%c48, %c0_13], %10 {strides = array<i32>} : memref<80x4xbf16, #tpu.memory_space<vmem>>, vector<16x4xbf16>,
    %c0_14 = arith.constant 0 : index
    %c0_15 = arith.constant 0 : index
    %12 = vector.load %arg6[%c0_14, %c0_15] : memref<80x4xbf16, #tpu.memory_space<vmem>>, vector<64x4xbf16>
    %c0_16 = arith.constant 0 : index
    %c0_17 = arith.constant 0 : index
    %c0_18 = arith.constant 0 : index
    %13 = vector.load %arg3[%c0_16, %c0_17, %c0_18] : memref<3x4x128xbf16, #tpu.memory_space<vmem>>, vector<1x4x128xbf16>
    %14 = vector.shape_cast %13 : vector<1x4x128xbf16> to vector<4x128xbf16>
    %cst = arith.constant dense<0.000000e+00> : vector<64x128xf32>
    %15 = tpu.matmul %12, %14, %cst {dimension_numbers = #tpu.dot_dimension_numbers<[1], [0], [0], [1], [0, 0, 1, 1], [], []>} : vector<64x4xbf16>, vector<4x128xbf16>, vector<64x128xf32> -> vector<64x128xf32>
    %c1_19 = arith.constant 1 : index
    %c0_20 = arith.constant 0 : index
    %16 = vector.load %arg6[%c1_19, %c0_20] : memref<80x4xbf16, #tpu.memory_space<vmem>>, vector<64x4xbf16>
    %c1_21 = arith.constant 1 : index
    %c0_22 = arith.constant 0 : index
    %c0_23 = arith.constant 0 : index
    %17 = vector.load %arg3[%c1_21, %c0_22, %c0_23] : memref<3x4x128xbf16, #tpu.memory_space<vmem>>, vector<1x4x128xbf16>
    %18 = vector.shape_cast %17 : vector<1x4x128xbf16> to vector<4x128xbf16>
    %cst_24 = arith.constant dense<0.000000e+00> : vector<64x128xf32>
    %19 = tpu.matmul %16, %18, %cst_24 {dimension_numbers = #tpu.dot_dimension_numbers<[1], [0], [0], [1], [0, 0, 1, 1], [], []>} : vector<64x4xbf16>, vector<4x128xbf16>, vector<64x128xf32> -> vector<64x128xf32>
    %20 = arith.addf %15, %19 : vector<64x128xf32>
    %c2 = arith.constant 2 : index
    %c0_25 = arith.constant 0 : index
    %21 = vector.load %arg6[%c2, %c0_25] : memref<80x4xbf16, #tpu.memory_space<vmem>>, vector<64x4xbf16>
    %c2_26 = arith.constant 2 : index
    %c0_27 = arith.constant 0 : index
    %c0_28 = arith.constant 0 : index
    %22 = vector.load %arg3[%c2_26, %c0_27, %c0_28] : memref<3x4x128xbf16, #tpu.memory_space<vmem>>, vector<1x4x128xbf16>
    %23 = vector.shape_cast %22 : vector<1x4x128xbf16> to vector<4x128xbf16>
    %cst_29 = arith.constant dense<0.000000e+00> : vector<64x128xf32>
    %24 = tpu.matmul %21, %23, %cst_29 {dimension_numbers = #tpu.dot_dimension_numbers<[1], [0], [0], [1], [0, 0, 1, 1], [], []>} : vector<64x4xbf16>, vector<4x128xbf16>, vector<64x128xf32> -> vector<64x128xf32>
    %25 = arith.addf %20, %24 : vector<64x128xf32>
    %c0_30 = arith.constant 0 : index
    %c0_31 = arith.constant 0 : index
    %26 = vector.load %arg4[%c0_30, %c0_31] : memref<1x128xf32, #tpu.memory_space<vmem>>, vector<1x128xf32>
    %27 = vector.extract_strided_slice %25 {offsets = [14, 0], sizes = [16, 128], strides = [1, 1]} : vector<64x128xf32> to vector<16x128xf32>
    %28 = vector.broadcast %26 : vector<1x128xf32> to vector<16x128xf32>
    %29 = arith.addf %27, %28 : vector<16x128xf32>
    %c0_32 = arith.constant 0 : index
    %c0_33 = arith.constant 0 : index
    %c0_34 = arith.constant 0 : index
    %30 = vector.load %arg5[%c0_32, %c0_33, %c0_34] : memref<2x16x128xf32, #tpu.memory_space<vmem>>, vector<1x16x128xf32>
    %31 = vector.shape_cast %30 : vector<1x16x128xf32> to vector<16x128xf32>
    %32 = vector.shape_cast %29 : vector<16x128xf32> to vector<1x16x128xf32>
    tpu.vector_store %arg5[%c0_32, %c0_33, %c0_34], %32 {strides = array<i32>} : memref<2x16x128xf32, #tpu.memory_space<vmem>>, vector<1x16x128xf32>,
    %33 = vector.extract_strided_slice %25 {offsets = [46, 0], sizes = [16, 128], strides = [1, 1]} : vector<64x128xf32> to vector<16x128xf32>
    %34 = vector.broadcast %26 : vector<1x128xf32> to vector<16x128xf32>
    %35 = arith.addf %33, %34 : vector<16x128xf32>
    %c1_35 = arith.constant 1 : index
    %c0_36 = arith.constant 0 : index
    %c0_37 = arith.constant 0 : index
    %36 = vector.load %arg5[%c1_35, %c0_36, %c0_37] : memref<2x16x128xf32, #tpu.memory_space<vmem>>, vector<1x16x128xf32>
    %37 = vector.shape_cast %36 : vector<1x16x128xf32> to vector<16x128xf32>
    %38 = vector.shape_cast %35 : vector<16x128xf32> to vector<1x16x128xf32>
    tpu.vector_store %arg5[%c1_35, %c0_36, %c0_37], %38 {strides = array<i32>} : memref<2x16x128xf32, #tpu.memory_space<vmem>>, vector<1x16x128xf32>,
    return
  }
  func.func @transform_0(%arg0: i32) -> (i32, i32, i32) {
    %c0_i32 = arith.constant 0 : i32
    %c0_i32_0 = arith.constant 0 : i32
    %c0_i32_1 = arith.constant 0 : i32
    return %arg0, %c0_i32, %c0_i32_0 : i32, i32, i32
  }
  func.func @transform_1(%arg0: i32) -> (i32, i32, i32) {
    %c0_i32 = arith.constant 0 : i32
    %c0_i32_0 = arith.constant 0 : i32
    %c0_i32_1 = arith.constant 0 : i32
    return %arg0, %c0_i32, %c0_i32_0 : i32, i32, i32
  }
  func.func @transform_2(%arg0: i32) -> (i32, i32, i32) {
    %c0_i32 = arith.constant 0 : i32
    %c0_i32_0 = arith.constant 0 : i32
    %c0_i32_1 = arith.constant 0 : i32
    %c0_i32_2 = arith.constant 0 : i32
    return %c0_i32, %c0_i32_0, %c0_i32_1 : i32, i32, i32
  }
  func.func @transform_3(%arg0: i32) -> (i32, i32) {
    %c0_i32 = arith.constant 0 : i32
    %c0_i32_0 = arith.constant 0 : i32
    %c0_i32_1 = arith.constant 0 : i32
    return %c0_i32, %c0_i32_0 : i32, i32
  }
  func.func @transform_4(%arg0: i32) -> (i32, i32, i32) {
    %c0_i32 = arith.constant 0 : i32
    %c0_i32_0 = arith.constant 0 : i32
    %c0_i32_1 = arith.constant 0 : i32
    return %arg0, %c0_i32, %c0_i32_0 : i32, i32, i32
  }
}

</mosaic_0001>

<bundles_post_ra>
// kernel: model_streaming_wrapper_forward.1
= control target key start
LH: loop header
LB: loop body
LE: loop exit
PB: predicated region body
PF: predicated region fallthrough
CT: control target
= control target key end

     0   :  { %vm139_vm0 = vcmask 1041408   ;;  %v24_v0 = vlaneseq  ;;  %v485_v2 = vmov 1966171168   ;;  %vm48_vm1 = vcmask 31744   ;;  %v87_v26 = vld [vmem:[#allocation2 + $0x20] sm:$0x1]  ;;  %s578_s2 = inlined_call_operand.vmem [shape: bf16[3,4,128], index: 2, kind: input, shape index: {}]   ;;  %s579_s0 = inlined_call_operand.vmem [shape: bf16[2,2,4], index: 0, kind: input, shape index: {}]   ;;  %s580_s1 = inlined_call_operand.vmem [shape: bf16[2,16,4], index: 1, kind: input, shape index: {}]   ;;  %s581_s3 = inlined_call_operand.vmem [shape: f32[1,128], index: 3, kind: input, shape index: {}]   ;;  %s582_s4 = inlined_call_operand.vmem [shape: f32[2,16,128], index: 4, kind: output, shape index: {}]  }
   0x1   :  { %v411_v1 = vld [vmem:[%s578_s2 + $0x2] sm:$0x3]  ;;  %v22_v3 = vunpack.c.l.s4 %v485_v2  ;;  %v481_v5 = vld [vmem:[%s579_s0] ss:$0 sps:$4 sm:$0x11]   ;;  %v484_v9 = vld [vmem:[%s580_s1 + $0x8] sm:$0xff]  }
   0x2   :  { %477 = vmatprep.subr.msk.bf16.mxu1 %vm139_vm0, %v411_v1  ;;  %476 = vmatprep.subr.msk.bf16.mxu0 %vm139_vm0, %v411_v1  ;;  %v141_v4 = vsel %vm139_vm0, %v411_v1, 0  ;;  %v25_v6 = vshrl.u32 %v24_v0, 7  ;;  %v482_v7 = vld [vmem:[%s580_s1] sm:$0xff]   ;;  %81 = vst.msk [vmem:[#allocation2 + $0x18] sm:$0xff] %vm48_vm1, %v484_v9  ;;  %vm38_vm2 = vcmask 31751   ;;  %v123_v27 = vshll.u32 %v87_v26, 16 }
   0x3   :  { %475 = vmatpush3.bf16.msra.mxu1 %v141_v4  ;;  %445 = vmatpush3.bf16.msra.mxu0 %v141_v4  ;;  %v23_v8 = vunpack.c.0.s8 %v22_v3  ;;  %49 = vst.msk [vmem:[#allocation2 + $0x8] sm:$0xff] %vm48_vm1, %v482_v7  ;;  %v483_v10 = vld [vmem:[%s579_s0 + $0x1] ss:$0 sps:$4 sm:$0x11]   ;;  %v420_v13 = vld [vmem:[%s578_s2 + $0x4] sm:$0x3] }
   0x4   :  { %v86_v12 = vld [vmem:[%s578_s2] sm:$0x3]  ;;  %479 = vmatprep.subr.msk.bf16.mxu0 %vm139_vm0, %v420_v13  ;;  %v125_v41 = vrot.slane %v123_v27, 1  ;;  %vm90_vm3 = vsmask.f32 7424  ;;  %vm288_vm4 = vcmask 1046528  }
   0x5   :  { %v26_v11 = vsub.s32 %v23_v8, %v25_v6  ;;  %478 = vmatprep.subr.msk.bf16.mxu1 %vm139_vm0, %v86_v12  ;;  %v215_v52 = vsel %vm139_vm0, %v86_v12, 0  ;;  %v311_v53 = vsel %vm139_vm0, %v420_v13, 0  ;;  %v296_v59 = vrot.slane %v87_v26, 1 }
   0x7   :  { %v27_v14 = vrot.slane %v481_v5, %v26_v11  ;;  %v60_v15 = vrot.slane %v483_v10, %v26_v11  ;;  %v425_v10 = vld [vmem:[%s581_s3] ss:$0 sm:$0xff] }
   0x9   :  { %v28_v16 = vcombine.low %v27_v14, %v27_v14  ;;  %v61_v17 = vcombine.low %v60_v15, %v60_v15  ;;  %v85_v23 = vld [vmem:[#allocation2 + $0x18] sm:$0xff] }
   0xa   :  { %v83_v21 = vld [vmem:[#allocation2 + $0x8] sm:$0xff]  ;;  %v115_v25 = vshll.u32 %v85_v23, 16  ;;  %v119_v31 = vshrl.u32 %v85_v23, 16  ;;  %v294_v56 = vrot.slane %v85_v23, 1 }
   0xb   :  { %v35_v18 = vrot.slane %v28_v16, %v26_v11  ;;  %v68_v19 = vrot.slane %v61_v17, %v26_v11  ;;  %v99_v24 = vshll.u32 %v83_v21, 16  ;;  %v103_v29 = vshrl.u32 %v83_v21, 16 }
   0xc   :  { %v117_v30 = vrot.slane %v115_v25, 1  ;;  %v290_v45 = vrot.slane %v83_v21, 1  ;;  %v297_v60 = vsel %vm288_vm4, %v294_v56, %v296_v59 }
   0xd   :  { %v36_v20 = vcombine.low %v35_v18, %v35_v18  ;;  %v69_v22 = vcombine.low %v68_v19, %v68_v19  ;;  %v101_v28 = vrot.slane %v99_v24, 1 }
   0xe   :  { %v121_v40 = vor.u32 %v119_v31, %v117_v30 }
   0xf   :  { %39 = vst.msk [vmem:[#allocation2] sm:$0x80] %vm38_vm2, %v36_v20  ;;  %71 = vst.msk [vmem:[#allocation2 + $0x10] sm:$0x80] %vm38_vm2, %v69_v22  ;;  %v105_v39 = vor.u32 %v103_v29, %v101_v28 }
  0x10   :  { %v126_v49 = vsel %vm90_vm3, %v121_v40, %v125_v41 }
  0x16   :  { %v82_v32 = vld [vmem:[#allocation2] sm:$0xff]  ;;  %v84_v33 = vld [vmem:[#allocation2 + $0x10] sm:$0xff] }
  0x17   :  { %v92_v34 = vshrl.u32 %v82_v32, 16  ;;  %v94_v35 = vshll.u32 %v82_v32, 16  ;;  %v107_v36 = vshll.u32 %v84_v33, 16  ;;  %v111_v37 = vshrl.u32 %v84_v33, 16  ;;  %v280_v38 = vld [vmem:[#allocation2] sm:$0xfe] }
  0x18   :  { %v289_v44 = vrot.slane %v280_v38, 1  ;;  %v292_v55 = vrot.slane %v84_v33, 1 }
  0x19   :  { %v96_v42 = vrot.slane %v94_v35, 1  ;;  %v109_v43 = vrot.slane %v107_v36, 1 }
  0x1a   :  { %v291_v54 = vsel %vm288_vm4, %v289_v44, %v290_v45  ;;  %v293_v57 = vsel %vm288_vm4, %v290_v45, %v292_v55  ;;  %v295_v58 = vsel %vm288_vm4, %v292_v55, %v294_v56 }
  0x1b   :  { %v97_v46 = vor.u32 %v96_v42, %v92_v34  ;;  %v113_v47 = vor.u32 %v111_v37, %v109_v43  ;;  %v110_v48 = vsel %vm90_vm3, %v105_v39, %v109_v43 }
  0x1d   :  { %v102_v50 = vsel %vm90_vm3, %v97_v46, %v101_v28  ;;  %v118_v51 = vsel %vm90_vm3, %v113_v47, %v117_v30 }
  0x1e   :  { %446 = vmatprep.mubr.msk.bf16.mxu0 %vm48_vm1, %v102_v50  ;;  %450 = vmatprep.mubr.msk.bf16.mxu1 %vm48_vm1, %v118_v51 }
  0x1f   :  { %447 = vmatmul.mubr.msk.bf16.vlgmr.msra.gmra.mrb[0].mxu0 %vm48_vm1, %v110_v48  ;;  %451 = vmatmul.mubr.msk.bf16.vlgmr.msra.gmra.mrb[0].mxu1 %vm48_vm1, %v126_v49 }
  0x20   :  { %455 = vmatpush3.bf16.msra.mxu1 %v215_v52  ;;  %465 = vmatpush3.bf16.msra.mxu0 %v311_v53 }
  0x21   :  { %456 = vmatprep.mubr.msk.bf16.mxu1 %vm48_vm1, %v82_v32  ;;  %466 = vmatprep.mubr.msk.bf16.mxu0 %vm48_vm1, %v291_v54 }
  0x27   :  { %457 = vmatmul.mubr.msk.bf16.vlgmr.msra.gmra.mrb[4].mxu1 %vm48_vm1, %v83_v21  ;;  %467 = vmatmul.mubr.msk.bf16.vlgmr.msra.gmra.mrb[4].mxu0 %vm48_vm1, %v293_v57 }
  0x28   :  { %460 = vmatprep.mubr.msk.bf16.mxu1 %vm48_vm1, %v84_v33  ;;  %470 = vmatprep.mubr.msk.bf16.mxu0 %vm48_vm1, %v295_v58 }
  0x2f   :  { %461 = vmatmul.mubr.msk.bf16.gmra.mrb[8].mxu1 %vm48_vm1, %v85_v23  ;;  %471 = vmatmul.mubr.msk.bf16.gmra.mrb[8].mxu0 %vm48_vm1, %v297_v60 }
  0xf2   :  { %v448_v61 = vpop.f32.mrb[0].mxu0  ;;  %v452_v62 = vpop.f32.mrb[0].mxu1 }
  0xf3   :  { %v177_v63 = vpop.f32.mrb[1].mxu0  ;;  %v192_v0 = vpop.f32.mrb[1].mxu1 }
  0xf4   :  { %v449_v1 = vpop.f32.mrb[2].mxu0  ;;  %v453_v2 = vpop.f32.mrb[2].mxu1 }
  0xf5   :  { %v179_v3 = vpop.f32.mrb[3].mxu0  ;;  %v194_v4 = vpop.f32.mrb[3].mxu1 }
  0xfa   :  { %v458_v5 = vpop.f32.mrb[4].mxu1  ;;  %v468_v6 = vpop.f32.mrb[4].mxu0 }
  0xfb   :  { %v259_v7 = vadd.f32 %v458_v5, %v448_v61  ;;  %v251_v8 = vpop.f32.mrb[5].mxu1  ;;  %v347_v9 = vpop.f32.mrb[5].mxu0 }
  0xfc   :  { %v459_v11 = vpop.f32.mrb[6].mxu1  ;;  %v469_v12 = vpop.f32.mrb[6].mxu0 }
  0xfd   :  { %v377_v13 = vadd.f32 %v468_v6, %v259_v7  ;;  %v262_v14 = vadd.f32 %v459_v11, %v449_v1  ;;  %v253_v15 = vpop.f32.mrb[7].mxu1  ;;  %v349_v16 = vpop.f32.mrb[7].mxu0 }
  0xfe   :  { %v254_v17 = vadd.f32 %v253_v15, %v179_v3 }
  0xff   :  { %v390_v18 = vadd.f32 %v425_v10, %v377_v13  ;;  %v378_v19 = vadd.f32 %v469_v12, %v262_v14 }
 0x100   :  { %v376_v20 = vadd.f32 %v349_v16, %v254_v17 }
 0x101   :  { %393 = vst [vmem:[%s582_s4 + $0x2] sm:$0xff] %v390_v18  ;;  %v391_v21 = vadd.f32 %v425_v10, %v378_v19 }
 0x102   :  { %v389_v22 = vadd.f32 %v425_v10, %v376_v20  ;;  %v462_v23 = vpop.f32.mrb[8].mxu1  ;;  %v472_v24 = vpop.f32.mrb[8].mxu0 }
 0x103   :  { %394 = vst [vmem:[%s582_s4 + $0xa] sm:$0x3f] %v391_v21  ;;  %v274_v25 = vadd.f32 %v462_v23, %v452_v62  ;;  %v266_v26 = vpop.f32.mrb[9].mxu1  ;;  %v362_v27 = vpop.f32.mrb[9].mxu0 }
 0x104   :  { %392 = vst [vmem:[%s582_s4 - $0x6] sm:$0xc0] %v389_v22  ;;  %v463_v28 = vpop.f32.mrb[10].mxu1  ;;  %v473_v29 = vpop.f32.mrb[10].mxu0 }
 0x105   :  { %v380_v30 = vadd.f32 %v472_v24, %v274_v25  ;;  %v277_v31 = vadd.f32 %v463_v28, %v453_v2  ;;  %v268_v32 = vpop.f32.mrb[11].mxu1  ;;  %v364_v33 = vpop.f32.mrb[11].mxu0 }
 0x106   :  { %v269_v34 = vadd.f32 %v268_v32, %v194_v4 }
 0x107   :  { %v396_v35 = vadd.f32 %v425_v10, %v380_v30  ;;  %v381_v36 = vadd.f32 %v473_v29, %v277_v31 }
 0x108   :  { %v379_v37 = vadd.f32 %v364_v33, %v269_v34 }
 0x109   :  { %427 = vst [vmem:[%s582_s4 + $0x12] sm:$0xff] %v396_v35  ;;  %v397_v38 = vadd.f32 %v425_v10, %v381_v36 }
 0x10a   :  { %v395_v39 = vadd.f32 %v425_v10, %v379_v37 }
 0x10b   :  { %428 = vst [vmem:[%s582_s4 + $0x1a] sm:$0x3f] %v397_v38 }
 0x10c   :  { %426 = vst [vmem:[%s582_s4 + $0xa] sm:$0xc0] %v395_v39 }

</bundles_post_ra>
